<compile_context>
chip_gen: v7x
topology: tpu7x:2x2x1
jax: 0.10.0
libtpu: 0.0.40
codegen_flags: <defaults>
</compile_context>

<pallas_src>
import functools

import jax
import jax.numpy as jnp
from jax.experimental import pallas as pl
from jax.experimental.pallas import tpu as pltpu

BN_EPS = 1e-5
LANE = 128
SUBLANE = 8
KH = KW = 3


def _round_up(x, m):
    return (x + m - 1) // m * m


def _vmem_limit_bytes():
    """Generation-aware scoped-VMEM limit (v5e/v6e: 128 MiB phys, v7x: 64 MiB/TC)."""
    try:
        cap = int(pltpu.get_tpu_info().vmem_capacity_bytes)
    except Exception:
        cap = 64 * 1024 * 1024
    return max(32 * 1024 * 1024, min(cap - 16 * 1024 * 1024, 96 * 1024 * 1024))


def _pick_tile_h(H, W, target_rows=2048):
    """Divisor of H with tile_h*W a multiple of 8, close to target_rows."""
    under, over = None, None
    for d in range(1, H + 1):
        if H % d == 0 and (d * W) % SUBLANE == 0:
            if d * W <= target_rows:
                under = d                    # keeps growing -> largest under target
            elif over is None:
                over = d                     # smallest valid above target
    if under is not None:
        return under
    if over is not None:
        return over
    return H


def _pick_chunk_h(tile_h, W, target_rows=256):
    """Divisor of tile_h keeping the live accumulator (<= target_rows x 128 f32) small."""
    best = tile_h
    for d in range(1, tile_h + 1):
        if tile_h % d == 0 and d * W <= target_rows and (d * W) % SUBLANE == 0:
            best = d
    return best


@functools.partial(jax.jit, static_argnames=("tile_h",))
def conv_block_forward(x_nchw, weight, bias, gamma, beta, *, tile_h=None):
    """ReLU(BatchNorm2d(Conv2d_3x3_s1_p1(x))) with training-mode batch stats.

    x_nchw: (N, Cin, H, W); weight: (Cout, Cin, 3, 3); bias/gamma/beta: (Cout,).
    """
    del bias  # exactly cancelled by the training-mode BN mean subtraction

    N, Cin, H, W = x_nchw.shape
    Cout, Cin_w, kh_, kw_ = weight.shape
    assert (kh_, kw_) == (KH, KW) and Cin_w == Cin

    if tile_h is None:
        tile_h = _pick_tile_h(H, W)
    assert H % tile_h == 0, "tile_h must divide H"
    n_ht = H // tile_h
    tile_rows = tile_h * W
    n_blocks = N * n_ht
    M = N * H * W
    assert tile_rows % SUBLANE == 0 or n_blocks == 1, (
        "tile_h*W must be a multiple of 8; pick a different tile_h")

    chunk_h = _pick_chunk_h(tile_h, W)
    n_chunks = tile_h // chunk_h
    chunk_rows = chunk_h * W

    K3 = KW * Cin                       # kw taps unrolled into the contraction
    K3p = _round_up(K3, SUBLANE)
    cout_p = _round_up(Cout, LANE)      # lane-dense output channels
    CC = LANE                           # cout sub-tile per matmul
    n_cc = cout_p // CC

    # ------------------------- host layout prep -----------------------------
    # TODO(synk): keep the surrounding model NHWC end-to-end to drop the
    # NCHW<->NHWC transposes; each is a full extra HBM pass at realistic sizes.
    x_nhwc = jnp.transpose(x_nchw, (0, 2, 3, 1)).astype(jnp.float32)
    xp = jnp.pad(x_nhwc, ((0, 0), (1, 1), (1, 1), (0, 0)))          # (N,H+2,W+2,Cin)
    # Width-unroll the kw taps into channels: xk[n,hp,w, kw*Cin+ci] = xp[n,hp,w+kw,ci].
    # 3x input bytes in exchange for zero in-kernel patch copies and K = 3*Cin.
    xk = jnp.concatenate([xp[:, :, kw:kw + W, :] for kw in range(KW)], axis=-1)
    xk = jnp.pad(xk, ((0, 0), (0, 0), (0, 0), (0, K3p - K3))).astype(jnp.bfloat16)

    w_t = jnp.transpose(weight, (2, 3, 1, 0)).astype(jnp.float32)   # (KH,KW,Cin,Cout)
    w_k = w_t.reshape(KH, K3, Cout)                                 # row index = kw*Cin+ci
    w_k = jnp.pad(w_k, ((0, 0), (0, K3p - K3), (0, cout_p - Cout))).astype(jnp.bfloat16)

    vmem_limit = _vmem_limit_bytes()
    sems = ("parallel", "arbitrary")    # megacore shards the batch axis only

    def _conv_chunk(xk_ref, w_ref, h0, j):
        """f32 (chunk_rows, CC) conv tile for output rows starting at h0, cout chunk j."""
        acc = None
        for kh in range(KH):            # 3 taps, deepest-K matmuls, accumulate in vregs
            lhs = xk_ref[0, pl.ds(h0 + kh, chunk_h), :, :].reshape(chunk_rows, K3p)
            part = jnp.dot(lhs, w_ref[kh, :, j * CC:(j + 1) * CC],
                           preferred_element_type=jnp.float32)
            acc = part if acc is None else acc + part
        return acc

    # -------- pass 1: conv -> per-tile sum / sum-of-squares (no y stored) ----
    def stats_kernel(xk_ref, w_ref, sum_ref, sq_ref):
        t = pl.program_id(1)
        for j in range(n_cc):
            s = jnp.zeros((1, CC), jnp.float32)
            q = jnp.zeros((1, CC), jnp.float32)
            for c in range(n_chunks):
                acc = _conv_chunk(xk_ref, w_ref, t * tile_h + c * chunk_h, j)
                s = s + jnp.sum(acc, axis=0, keepdims=True)
                q = q + jnp.sum(acc * acc, axis=0, keepdims=True)
            sum_ref[0, :, j * CC:(j + 1) * CC] = s
            sq_ref[0, :, j * CC:(j + 1) * CC] = q

    conv_flops = 2 * M * (KH * K3p) * cout_p
    psum, psq = pl.pallas_call(
        stats_kernel,
        grid=(N, n_ht),
        in_specs=[
            pl.BlockSpec((1, H + 2, W, K3p), lambda n, t: (n, 0, 0, 0)),
            pl.BlockSpec((KH, K3p, cout_p), lambda n, t: (0, 0, 0)),
        ],
        out_specs=(
            pl.BlockSpec((1, 1, cout_p), lambda n, t: (n * n_ht + t, 0, 0)),
            pl.BlockSpec((1, 1, cout_p), lambda n, t: (n * n_ht + t, 0, 0)),
        ),
        out_shape=(
            jax.ShapeDtypeStruct((n_blocks, 1, cout_p), jnp.float32),
            jax.ShapeDtypeStruct((n_blocks, 1, cout_p), jnp.float32),
        ),
        compiler_params=pltpu.CompilerParams(
            dimension_semantics=sems, vmem_limit_bytes=vmem_limit),
        cost_estimate=pl.CostEstimate(
            flops=conv_flops, transcendentals=0,
            bytes_accessed=xk.size * 2 + w_k.size * 2 + 2 * n_blocks * cout_p * 4),
    )(xk, w_k)

    # ----- tiny cross-tile BN reduction + folded per-channel scale / shift ---
    total = jnp.sum(psum[:, 0, :], axis=0)                          # (cout_p,)
    total_sq = jnp.sum(psq[:, 0, :], axis=0)
    mean = total / M
    # NOTE: E[y^2] - mean^2 in f32 can cancel for very large M / activations;
    # acceptable at these scales (documented), clamp guards the rsqrt.
    var = jnp.maximum(total_sq / M - mean * mean, 0.0)              # biased (training BN)
    inv_std = jax.lax.rsqrt(var + BN_EPS)
    gamma_p = jnp.pad(gamma.astype(jnp.float32), (0, cout_p - Cout))
    beta_p = jnp.pad(beta.astype(jnp.float32), (0, cout_p - Cout))
    scale = (gamma_p * inv_std).reshape(1, cout_p)
    shift = (beta_p - mean * gamma_p * inv_std).reshape(1, cout_p)

    # -------- pass 2: recompute conv, apply BN + ReLU, lane-dense stores -----
    def conv_bn_relu_kernel(xk_ref, w_ref, scale_ref, shift_ref, o_ref):
        t = pl.program_id(1)
        for c in range(n_chunks):
            h0 = t * tile_h + c * chunk_h
            for j in range(n_cc):
                acc = _conv_chunk(xk_ref, w_ref, h0, j)
                y = (acc * scale_ref[:, j * CC:(j + 1) * CC]
                     + shift_ref[:, j * CC:(j + 1) * CC])
                o_ref[c * chunk_rows:(c + 1) * chunk_rows, j * CC:(j + 1) * CC] = (
                    jnp.maximum(y, 0.0).astype(o_ref.dtype))

    out2d = pl.pallas_call(
        conv_bn_relu_kernel,
        grid=(N, n_ht),
        in_specs=[
            pl.BlockSpec((1, H + 2, W, K3p), lambda n, t: (n, 0, 0, 0)),
            pl.BlockSpec((KH, K3p, cout_p), lambda n, t: (0, 0, 0)),
            pl.BlockSpec((1, cout_p), lambda n, t: (0, 0)),
            pl.BlockSpec((1, cout_p), lambda n, t: (0, 0)),
        ],
        out_specs=pl.BlockSpec((tile_rows, cout_p), lambda n, t: (n * n_ht + t, 0)),
        out_shape=jax.ShapeDtypeStruct((M, cout_p), jnp.float32),
        compiler_params=pltpu.CompilerParams(
            dimension_semantics=sems, vmem_limit_bytes=vmem_limit),
        cost_estimate=pl.CostEstimate(
            flops=conv_flops, transcendentals=0,
            bytes_accessed=xk.size * 2 + w_k.size * 2 + 8 * cout_p + M * cout_p * 4),
    )(xk, w_k, scale, shift)

    out_nhwc = out2d.reshape(N, H, W, cout_p)[..., :Cout]
    return jnp.transpose(out_nhwc, (0, 3, 1, 2))                    # (N, Cout, H, W)


def reference_forward(x_nchw, weight, bias, gamma, beta):
    """Pure-JAX f32 reference mirroring the PyTorch training-mode forward."""
    y = jax.lax.conv_general_dilated(
        x_nchw, weight, window_strides=(1, 1), padding=((1, 1), (1, 1)),
        dimension_numbers=("NCHW", "OIHW", "NCHW"))
    y = y + bias[None, :, None, None]
    mean = jnp.mean(y, axis=(0, 2, 3), keepdims=True)
    var = jnp.mean((y - mean) ** 2, axis=(0, 2, 3), keepdims=True)  # biased var
    yn = (y - mean) * jax.lax.rsqrt(var + BN_EPS)
    yn = yn * gamma[None, :, None, None] + beta[None, :, None, None]
    return jnp.maximum(yn, 0.0)


if __name__ == "__main__":
    key = jax.random.PRNGKey(0)
    k_x, k_w, k_b, k_g, k_be = jax.random.split(key, 5)

    N, Cin, Cout, H, W = 2, 4, 8, 16, 16

    x = jax.random.normal(k_x, (N, Cin, H, W), dtype=jnp.float32)
    fan_in = Cin * 3 * 3
    bound = 1.0 / (fan_in ** 0.5)
    weight = jax.random.uniform(k_w, (Cout, Cin, 3, 3),
                                minval=-bound, maxval=bound, dtype=jnp.float32)
    bias = jax.random.uniform(k_b, (Cout,), minval=-bound, maxval=bound,
                              dtype=jnp.float32)
    gamma = jax.random.uniform(k_g, (Cout,), minval=0.5, maxval=1.5,
                               dtype=jnp.float32)
    beta = 0.1 * jax.random.normal(k_be, (Cout,), dtype=jnp.float32)

    # tile_h=8 -> grid (N=2, H-tiles=2): exercises the tiled path.
    out = jax.block_until_ready(
        conv_block_forward(x, weight, bias, gamma, beta, tile_h=8))

    # Kernel matmuls use bf16 inputs with f32 accumulation, so validate against
    # the f32 reference evaluated on bf16-rounded x / weight.
    x_bf = x.astype(jnp.bfloat16).astype(jnp.float32)
    w_bf = weight.astype(jnp.bfloat16).astype(jnp.float32)
    ref = jax.block_until_ready(reference_forward(x_bf, w_bf, bias, gamma, beta))

    assert out.shape == (N, Cout, H, W)
    assert bool(jnp.allclose(out, ref, atol=2e-3, rtol=2e-3)), "mismatch vs reference"
    print("KERNEL_OK")
</pallas_src>

<mosaic_0001>
module attributes {stable_mosaic.version = 11 : i64} {
  func.func @conv_bn_relu_kernel(%arg0: i32, %arg1: i32, %arg2: memref<1x18x16x16xbf16, #tpu.memory_space<vmem>>, %arg3: memref<3x16x128xbf16, #tpu.memory_space<vmem>>, %arg4: memref<1x128xf32, #tpu.memory_space<vmem>>, %arg5: memref<1x128xf32, #tpu.memory_space<vmem>>, %arg6: memref<128x128xf32, #tpu.memory_space<vmem>>) attributes {dimension_semantics = [#tpu.dimension_semantics<parallel>, #tpu.dimension_semantics<arbitrary>], iteration_bounds = array<i64: 2, 2>, scalar_prefetch = 0 : i64, scratch_operands = 0 : i64, tpu.core_type = #tpu.core_type<tc>, window_params = [{transform_indices = @transform_0, window_bounds = array<i64: 1, 18, 16, 16>}, {pipeline_mode = #tpu.pipeline_mode<synchronous>, transform_indices = @transform_1, window_bounds = array<i64: 3, 16, 128>}, {pipeline_mode = #tpu.pipeline_mode<synchronous>, transform_indices = @transform_2, window_bounds = array<i64: 1, 128>}, {pipeline_mode = #tpu.pipeline_mode<synchronous>, transform_indices = @transform_3, window_bounds = array<i64: 1, 128>}, {transform_indices = @transform_4, window_bounds = array<i64: 128, 128>}]} {
    %c8_i32 = arith.constant 8 : i32
    %0 = arith.muli %arg1, %c8_i32 : i32
    %c0_i32 = arith.constant 0 : i32
    %1 = arith.addi %0, %c0_i32 : i32
    %c0_i32_0 = arith.constant 0 : i32
    %2 = arith.addi %1, %c0_i32_0 : i32
    %c0 = arith.constant 0 : index
    %3 = arith.index_cast %2 : i32 to index
    %c0_1 = arith.constant 0 : index
    %c0_2 = arith.constant 0 : index
    %4 = vector.load %arg2[%c0, %3, %c0_1, %c0_2] : memref<1x18x16x16xbf16, #tpu.memory_space<vmem>>, vector<1x8x16x16xbf16>
    %5 = vector.shape_cast %4 : vector<1x8x16x16xbf16> to vector<8x16x16xbf16>
    %6 = vector.shape_cast %5 : vector<8x16x16xbf16> to vector<128x16xbf16>
    %c0_3 = arith.constant 0 : index
    %c0_4 = arith.constant 0 : index
    %c0_5 = arith.constant 0 : index
    %7 = vector.load %arg3[%c0_3, %c0_4, %c0_5] : memref<3x16x128xbf16, #tpu.memory_space<vmem>>, vector<1x16x128xbf16>
    %8 = vector.shape_cast %7 : vector<1x16x128xbf16> to vector<16x128xbf16>
    %cst = arith.constant dense<0.000000e+00> : vector<128x128xf32>
    %9 = tpu.matmul %6, %8, %cst {dimension_numbers = #tpu.dot_dimension_numbers<[1], [0], [0], [1], [0, 0, 1, 1], [], []>} : vector<128x16xbf16>, vector<16x128xbf16>, vector<128x128xf32> -> vector<128x128xf32>
    %c1_i32 = arith.constant 1 : i32
    %10 = arith.addi %1, %c1_i32 : i32
    %c0_6 = arith.constant 0 : index
    %11 = arith.index_cast %10 : i32 to index
    %c0_7 = arith.constant 0 : index
    %c0_8 = arith.constant 0 : index
    %12 = vector.load %arg2[%c0_6, %11, %c0_7, %c0_8] : memref<1x18x16x16xbf16, #tpu.memory_space<vmem>>, vector<1x8x16x16xbf16>
    %13 = vector.shape_cast %12 : vector<1x8x16x16xbf16> to vector<8x16x16xbf16>
    %14 = vector.shape_cast %13 : vector<8x16x16xbf16> to vector<128x16xbf16>
    %c1 = arith.constant 1 : index
    %c0_9 = arith.constant 0 : index
    %c0_10 = arith.constant 0 : index
    %15 = vector.load %arg3[%c1, %c0_9, %c0_10] : memref<3x16x128xbf16, #tpu.memory_space<vmem>>, vector<1x16x128xbf16>
    %16 = vector.shape_cast %15 : vector<1x16x128xbf16> to vector<16x128xbf16>
    %cst_11 = arith.constant dense<0.000000e+00> : vector<128x128xf32>
    %17 = tpu.matmul %14, %16, %cst_11 {dimension_numbers = #tpu.dot_dimension_numbers<[1], [0], [0], [1], [0, 0, 1, 1], [], []>} : vector<128x16xbf16>, vector<16x128xbf16>, vector<128x128xf32> -> vector<128x128xf32>
    %18 = arith.addf %9, %17 : vector<128x128xf32>
    %c2_i32 = arith.constant 2 : i32
    %19 = arith.addi %1, %c2_i32 : i32
    %c0_12 = arith.constant 0 : index
    %20 = arith.index_cast %19 : i32 to index
    %c0_13 = arith.constant 0 : index
    %c0_14 = arith.constant 0 : index
    %21 = vector.load %arg2[%c0_12, %20, %c0_13, %c0_14] : memref<1x18x16x16xbf16, #tpu.memory_space<vmem>>, vector<1x8x16x16xbf16>
    %22 = vector.shape_cast %21 : vector<1x8x16x16xbf16> to vector<8x16x16xbf16>
    %23 = vector.shape_cast %22 : vector<8x16x16xbf16> to vector<128x16xbf16>
    %c2 = arith.constant 2 : index
    %c0_15 = arith.constant 0 : index
    %c0_16 = arith.constant 0 : index
    %24 = vector.load %arg3[%c2, %c0_15, %c0_16] : memref<3x16x128xbf16, #tpu.memory_space<vmem>>, vector<1x16x128xbf16>
    %25 = vector.shape_cast %24 : vector<1x16x128xbf16> to vector<16x128xbf16>
    %cst_17 = arith.constant dense<0.000000e+00> : vector<128x128xf32>
    %26 = tpu.matmul %23, %25, %cst_17 {dimension_numbers = #tpu.dot_dimension_numbers<[1], [0], [0], [1], [0, 0, 1, 1], [], []>} : vector<128x16xbf16>, vector<16x128xbf16>, vector<128x128xf32> -> vector<128x128xf32>
    %27 = arith.addf %18, %26 : vector<128x128xf32>
    %c0_18 = arith.constant 0 : index
    %c0_19 = arith.constant 0 : index
    %28 = vector.load %arg4[%c0_18, %c0_19] : memref<1x128xf32, #tpu.memory_space<vmem>>, vector<1x128xf32>
    %29 = vector.broadcast %28 : vector<1x128xf32> to vector<128x128xf32>
    %30 = arith.mulf %27, %29 : vector<128x128xf32>
    %c0_20 = arith.constant 0 : index
    %c0_21 = arith.constant 0 : index
    %31 = vector.load %arg5[%c0_20, %c0_21] : memref<1x128xf32, #tpu.memory_space<vmem>>, vector<1x128xf32>
    %32 = vector.broadcast %31 : vector<1x128xf32> to vector<128x128xf32>
    %33 = arith.addf %30, %32 : vector<128x128xf32>
    %cst_22 = arith.constant 0.000000e+00 : f32
    %34 = vector.broadcast %cst_22 : f32 to vector<128x128xf32>
    %35 = arith.maximumf %33, %34 : vector<128x128xf32>
    %c0_23 = arith.constant 0 : index
    %c0_24 = arith.constant 0 : index
    %36 = vector.load %arg6[%c0_23, %c0_24] : memref<128x128xf32, #tpu.memory_space<vmem>>, vector<128x128xf32>
    tpu.vector_store %arg6[%c0_23, %c0_24], %35 {strides = array<i32>} : memref<128x128xf32, #tpu.memory_space<vmem>>, vector<128x128xf32>,
    return
  }
  func.func @transform_0(%arg0: i32, %arg1: i32) -> (i32, i32, i32, i32) {
    %c0_i32 = arith.constant 0 : i32
    %c0_i32_0 = arith.constant 0 : i32
    %c0_i32_1 = arith.constant 0 : i32
    %c0_i32_2 = arith.constant 0 : i32
    return %arg0, %c0_i32, %c0_i32_0, %c0_i32_1 : i32, i32, i32, i32
  }
  func.func @transform_1(%arg0: i32, %arg1: i32) -> (i32, i32, i32) {
    %c0_i32 = arith.constant 0 : i32
    %c0_i32_0 = arith.constant 0 : i32
    %c0_i32_1 = arith.constant 0 : i32
    %c0_i32_2 = arith.constant 0 : i32
    return %c0_i32, %c0_i32_0, %c0_i32_1 : i32, i32, i32
  }
  func.func @transform_2(%arg0: i32, %arg1: i32) -> (i32, i32) {
    %c0_i32 = arith.constant 0 : i32
    %c0_i32_0 = arith.constant 0 : i32
    %c0_i32_1 = arith.constant 0 : i32
    return %c0_i32, %c0_i32_0 : i32, i32
  }
  func.func @transform_3(%arg0: i32, %arg1: i32) -> (i32, i32) {
    %c0_i32 = arith.constant 0 : i32
    %c0_i32_0 = arith.constant 0 : i32
    %c0_i32_1 = arith.constant 0 : i32
    return %c0_i32, %c0_i32_0 : i32, i32
  }
  func.func @transform_4(%arg0: i32, %arg1: i32) -> (i32, i32) {
    %c2_i32 = arith.constant 2 : i32
    %0 = arith.muli %arg0, %c2_i32 : i32
    %1 = arith.addi %0, %arg1 : i32
    %c0_i32 = arith.constant 0 : i32
    %c0_i32_0 = arith.constant 0 : i32
    return %1, %c0_i32 : i32, i32
  }
}

module attributes {stable_mosaic.version = 11 : i64} {
  func.func @stats_kernel(%arg0: i32, %arg1: i32, %arg2: memref<1x18x16x16xbf16, #tpu.memory_space<vmem>>, %arg3: memref<3x16x128xbf16, #tpu.memory_space<vmem>>, %arg4: memref<1x1x128xf32, #tpu.memory_space<vmem>>, %arg5: memref<1x1x128xf32, #tpu.memory_space<vmem>>) attributes {dimension_semantics = [#tpu.dimension_semantics<parallel>, #tpu.dimension_semantics<arbitrary>], iteration_bounds = array<i64: 2, 2>, scalar_prefetch = 0 : i64, scratch_operands = 0 : i64, tpu.core_type = #tpu.core_type<tc>, window_params = [{transform_indices = @transform_0, window_bounds = array<i64: 1, 18, 16, 16>}, {pipeline_mode = #tpu.pipeline_mode<synchronous>, transform_indices = @transform_1, window_bounds = array<i64: 3, 16, 128>}, {transform_indices = @transform_2, window_bounds = array<i64: 1, 1, 128>}, {transform_indices = @transform_3, window_bounds = array<i64: 1, 1, 128>}]} {
    %cst = arith.constant 0.000000e+00 : f32
    %0 = vector.broadcast %cst : f32 to vector<1x128xf32>
    %cst_0 = arith.constant 0.000000e+00 : f32
    %1 = vector.broadcast %cst_0 : f32 to vector<1x128xf32>
    %c8_i32 = arith.constant 8 : i32
    %2 = arith.muli %arg1, %c8_i32 : i32
    %c0_i32 = arith.constant 0 : i32
    %3 = arith.addi %2, %c0_i32 : i32
    %c0_i32_1 = arith.constant 0 : i32
    %4 = arith.addi %3, %c0_i32_1 : i32
    %c0 = arith.constant 0 : index
    %5 = arith.index_cast %4 : i32 to index
    %c0_2 = arith.constant 0 : index
    %c0_3 = arith.constant 0 : index
    %6 = vector.load %arg2[%c0, %5, %c0_2, %c0_3] : memref<1x18x16x16xbf16, #tpu.memory_space<vmem>>, vector<1x8x16x16xbf16>
    %7 = vector.shape_cast %6 : vector<1x8x16x16xbf16> to vector<8x16x16xbf16>
    %8 = vector.shape_cast %7 : vector<8x16x16xbf16> to vector<128x16xbf16>
    %c0_4 = arith.constant 0 : index
    %c0_5 = arith.constant 0 : index
    %c0_6 = arith.constant 0 : index
    %9 = vector.load %arg3[%c0_4, %c0_5, %c0_6] : memref<3x16x128xbf16, #tpu.memory_space<vmem>>, vector<1x16x128xbf16>
    %10 = vector.shape_cast %9 : vector<1x16x128xbf16> to vector<16x128xbf16>
    %cst_7 = arith.constant dense<0.000000e+00> : vector<128x128xf32>
    %11 = tpu.matmul %8, %10, %cst_7 {dimension_numbers = #tpu.dot_dimension_numbers<[1], [0], [0], [1], [0, 0, 1, 1], [], []>} : vector<128x16xbf16>, vector<16x128xbf16>, vector<128x128xf32> -> vector<128x128xf32>
    %c1_i32 = arith.constant 1 : i32
    %12 = arith.addi %3, %c1_i32 : i32
    %c0_8 = arith.constant 0 : index
    %13 = arith.index_cast %12 : i32 to index
    %c0_9 = arith.constant 0 : index
    %c0_10 = arith.constant 0 : index
    %14 = vector.load %arg2[%c0_8, %13, %c0_9, %c0_10] : memref<1x18x16x16xbf16, #tpu.memory_space<vmem>>, vector<1x8x16x16xbf16>
    %15 = vector.shape_cast %14 : vector<1x8x16x16xbf16> to vector<8x16x16xbf16>
    %16 = vector.shape_cast %15 : vector<8x16x16xbf16> to vector<128x16xbf16>
    %c1 = arith.constant 1 : index
    %c0_11 = arith.constant 0 : index
    %c0_12 = arith.constant 0 : index
    %17 = vector.load %arg3[%c1, %c0_11, %c0_12] : memref<3x16x128xbf16, #tpu.memory_space<vmem>>, vector<1x16x128xbf16>
    %18 = vector.shape_cast %17 : vector<1x16x128xbf16> to vector<16x128xbf16>
    %cst_13 = arith.constant dense<0.000000e+00> : vector<128x128xf32>
    %19 = tpu.matmul %16, %18, %cst_13 {dimension_numbers = #tpu.dot_dimension_numbers<[1], [0], [0], [1], [0, 0, 1, 1], [], []>} : vector<128x16xbf16>, vector<16x128xbf16>, vector<128x128xf32> -> vector<128x128xf32>
    %20 = arith.addf %11, %19 : vector<128x128xf32>
    %c2_i32 = arith.constant 2 : i32
    %21 = arith.addi %3, %c2_i32 : i32
    %c0_14 = arith.constant 0 : index
    %22 = arith.index_cast %21 : i32 to index
    %c0_15 = arith.constant 0 : index
    %c0_16 = arith.constant 0 : index
    %23 = vector.load %arg2[%c0_14, %22, %c0_15, %c0_16] : memref<1x18x16x16xbf16, #tpu.memory_space<vmem>>, vector<1x8x16x16xbf16>
    %24 = vector.shape_cast %23 : vector<1x8x16x16xbf16> to vector<8x16x16xbf16>
    %25 = vector.shape_cast %24 : vector<8x16x16xbf16> to vector<128x16xbf16>
    %c2 = arith.constant 2 : index
    %c0_17 = arith.constant 0 : index
    %c0_18 = arith.constant 0 : index
    %26 = vector.load %arg3[%c2, %c0_17, %c0_18] : memref<3x16x128xbf16, #tpu.memory_space<vmem>>, vector<1x16x128xbf16>
    %27 = vector.shape_cast %26 : vector<1x16x128xbf16> to vector<16x128xbf16>
    %cst_19 = arith.constant dense<0.000000e+00> : vector<128x128xf32>
    %28 = tpu.matmul %25, %27, %cst_19 {dimension_numbers = #tpu.dot_dimension_numbers<[1], [0], [0], [1], [0, 0, 1, 1], [], []>} : vector<128x16xbf16>, vector<16x128xbf16>, vector<128x128xf32> -> vector<128x128xf32>
    %29 = arith.addf %20, %28 : vector<128x128xf32>
    %cst_20 = arith.constant dense<0.000000e+00> : vector<128xf32>
    %30 = vector.multi_reduction <add>, %29, %cst_20 [0] : vector<128x128xf32> to vector<128xf32>
    %31 = vector.shape_cast %30 : vector<128xf32> to vector<1x128xf32>
    %32 = arith.addf %0, %31 : vector<1x128xf32>
    %33 = arith.mulf %29, %29 : vector<128x128xf32>
    %cst_21 = arith.constant dense<0.000000e+00> : vector<128xf32>
    %34 = vector.multi_reduction <add>, %33, %cst_21 [0] : vector<128x128xf32> to vector<128xf32>
    %35 = vector.shape_cast %34 : vector<128xf32> to vector<1x128xf32>
    %36 = arith.addf %1, %35 : vector<1x128xf32>
    %c0_22 = arith.constant 0 : index
    %c0_23 = arith.constant 0 : index
    %c0_24 = arith.constant 0 : index
    %37 = vector.load %arg4[%c0_22, %c0_23, %c0_24] : memref<1x1x128xf32, #tpu.memory_space<vmem>>, vector<1x1x128xf32>
    %38 = vector.shape_cast %37 : vector<1x1x128xf32> to vector<1x128xf32>
    %39 = vector.shape_cast %32 : vector<1x128xf32> to vector<1x1x128xf32>
    tpu.vector_store %arg4[%c0_22, %c0_23, %c0_24], %39 {strides = array<i32>} : memref<1x1x128xf32, #tpu.memory_space<vmem>>, vector<1x1x128xf32>,
    %c0_25 = arith.constant 0 : index
    %c0_26 = arith.constant 0 : index
    %c0_27 = arith.constant 0 : index
    %40 = vector.load %arg5[%c0_25, %c0_26, %c0_27] : memref<1x1x128xf32, #tpu.memory_space<vmem>>, vector<1x1x128xf32>
    %41 = vector.shape_cast %40 : vector<1x1x128xf32> to vector<1x128xf32>
    %42 = vector.shape_cast %36 : vector<1x128xf32> to vector<1x1x128xf32>
    tpu.vector_store %arg5[%c0_25, %c0_26, %c0_27], %42 {strides = array<i32>} : memref<1x1x128xf32, #tpu.memory_space<vmem>>, vector<1x1x128xf32>,
    return
  }
  func.func @transform_0(%arg0: i32, %arg1: i32) -> (i32, i32, i32, i32) {
    %c0_i32 = arith.constant 0 : i32
    %c0_i32_0 = arith.constant 0 : i32
    %c0_i32_1 = arith.constant 0 : i32
    %c0_i32_2 = arith.constant 0 : i32
    return %arg0, %c0_i32, %c0_i32_0, %c0_i32_1 : i32, i32, i32, i32
  }
  func.func @transform_1(%arg0: i32, %arg1: i32) -> (i32, i32, i32) {
    %c0_i32 = arith.constant 0 : i32
    %c0_i32_0 = arith.constant 0 : i32
    %c0_i32_1 = arith.constant 0 : i32
    %c0_i32_2 = arith.constant 0 : i32
    return %c0_i32, %c0_i32_0, %c0_i32_1 : i32, i32, i32
  }
  func.func @transform_2(%arg0: i32, %arg1: i32) -> (i32, i32, i32) {
    %c2_i32 = arith.constant 2 : i32
    %0 = arith.muli %arg0, %c2_i32 : i32
    %1 = arith.addi %0, %arg1 : i32
    %c0_i32 = arith.constant 0 : i32
    %c0_i32_0 = arith.constant 0 : i32
    %c0_i32_1 = arith.constant 0 : i32
    return %1, %c0_i32, %c0_i32_0 : i32, i32, i32
  }
  func.func @transform_3(%arg0: i32, %arg1: i32) -> (i32, i32, i32) {
    %c2_i32 = arith.constant 2 : i32
    %0 = arith.muli %arg0, %c2_i32 : i32
    %1 = arith.addi %0, %arg1 : i32
    %c0_i32 = arith.constant 0 : i32
    %c0_i32_0 = arith.constant 0 : i32
    %c0_i32_1 = arith.constant 0 : i32
    return %1, %c0_i32, %c0_i32_0 : i32, i32, i32
  }
}

</mosaic_0001>

<bundles_post_ra>
// kernel: conv_block_forward.3
= control target key start
LH: loop header
LB: loop body
LE: loop exit
PB: predicated region body
PF: predicated region fallthrough
CT: control target
= control target key end

     0   :  { %s1331_s15 = smov 0   ;;  %s1333_s16 = smov 0   ;;  %s1510_s0 = inlined_call_operand.vmem [shape: bf16[2,18,16,16], index: 0, kind: input, shape index: {}]   ;;  %s1511_s1 = inlined_call_operand.vmem [shape: bf16[3,16,128], index: 1, kind: input, shape index: {}]   ;;  %s1512_s2 = inlined_call_operand.vmem [shape: f32[1,128], index: 2, kind: input, shape index: {}]   ;;  %s1513_s3 = inlined_call_operand.vmem [shape: f32[1,128], index: 3, kind: input, shape index: {}]   ;;  %s1514_s4 = inlined_call_operand.vmem [shape: f32[512,128], index: 4, kind: output, shape index: {}]  }
   0x1   :  { %s1335_s17 = smov 0   ;;  %s1337_s18 = smov 0  }
   0x2   :  { %s1339_s19 = smov 0  }
   0x3 LB: > { %s23_s20 = sadd.s32 1, %s1296_s17  ;;  %s26_s21 = sadd.s32 1, %s1300_s18  ;;  %s1304_s19 = sphi %s1339_s19, %s14_s19   ;;  %s1300_s18 = sphi %s1337_s18, %s1518_s18   ;;  %s1296_s17 = sphi %s1335_s17, %s1517_s17   ;;  %s1292_s16 = sphi %s1333_s16, %s1516_s16   ;;  %s1288_s15 = sphi %s1331_s15, %s1515_s15  }
   0x4   : > { %p24_p0 = scmp.ge.s32.totalorder %s23_s20, 2  ;;  %p976_p1 = scmp.ge.s32.totalorder %s1304_s19, 1 }
   0x5   : > { %p178_p2 = scmp.lt.s32.totalorder %s1304_s19, 5 }
   0x6   : > { %s1520_s20 = smov (%p24_p0, %s23_s20), 0  ;;  %s1522_s21 = smov (!%p24_p0, %s26_s21), %s1300_s18 }
   0x7   : > { %p179_p3 = pnand %p976_p1, %p178_p2  ;;  %p28_p4 = scmp.ge.s32.totalorder %s1522_s21, 2 }
   0x8   : > { %v1239_v0 = vld [vmem:[%s1511_s1 + $0x8] sm:$0xff] (!%p179_p3)   ;;  %p206_p5 = scmp.lt.s32.totalorder (!%p179_p3), %s1292_s16, 1  ;;  %v1240_v1 = vld [vmem:[%s1511_s1] sm:$0xff] (!%p179_p3)   ;;  %v1243_v2 = vld [vmem:[%s1511_s1 + $0x10] sm:$0xff] (!%p179_p3)   ;;  %s1080_s30 = sshll.u32 (!%p179_p3), %s1288_s15, 6  ;;  %vm313_vm0 = vcmask (!%p179_p3), 130048  }
   0x9   : > { %s1524_s21 = smov (%p28_p4, %s1522_s21), 0  ;;  %182 = sbr.rel (%p179_p3) target bundleno = 288 (0x120), region = 36 }
   0xa   : > { %1110 = vmatprep.subr.bf16.mxu1 (!%p179_p3), %v1239_v0  ;;  %1128 = vmatprep.subr.bf16.mxu0 (!%p179_p3), %v1240_v1  ;;  %s978_s9 = sshll.u32 (!%p179_p3), %s1292_s16, 1  ;;  %v1435_v36 = vld [vmem:[%s1512_s2] ss:$0 sm:$0xff] (!%p179_p3) }
   0xb   : > { %1111 = vmatpush3.bf16.msra.mxu1 (!%p179_p3), %v1239_v0  ;;  %1129 = vmatpush3.bf16.msra.mxu0 (!%p179_p3), %v1240_v1  ;;  %s212_s10 = sadd.s32 (!%p179_p3), %s1288_s15, %s978_s9  ;;  %v1440_v39 = vld [vmem:[%s1513_s3] ss:$0 sm:$0xff] (!%p179_p3) }
   0xc   : > { %1164 = vmatprep.subr.bf16.mxu1 (!%p179_p3), %v1240_v1  ;;  %1146 = vmatprep.subr.bf16.mxu0 (!%p179_p3), %v1243_v2  ;;  %s979_s11 = sshll.u32 (!%p179_p3), %s212_s10, 4 }
   0xd   : > { %p214_p6 = scmp.lt.s32.totalorder (!%p179_p3), %s979_s11, 63 }
  0x10   : > { %s207_s26 = scalar_select %p206_p5, %s1292_s16, 1 }
  0x11   : > { %s1526_s11 = smov (!%p214_p6, %s979_s11), 63 }
  0x12   : > { %s1198_s29 = smul.u32 144, %s207_s26  ;;  %s980_s15 = sshll.u32 %s1526_s11, 3 }
  0x13   : > { %s1449_s24 = scalar_lea.vmem %s1514_s4, %s980_s15 }
  0x14   : > { %s210_s7 = scalar_lea.vmem %s1510_s0, %s1198_s29 }
  0x15   : > { %s1380_s8 = scalar_lea.vmem %s210_s7, %s1080_s30 }
  0x16   : > { %v1241_v3 = vld [vmem:[%s1380_s8 + $0x8] sm:$0xff]   ;;  %v1242_v4 = vld [vmem:[%s1380_s8] sm:$0xff]   ;;  %v1244_v5 = vld [vmem:[%s1380_s8 + $0x10] sm:$0xff]  }
  0x17   : > { %1112 = vmatprep.mubr.msk.bf16.mxu1 %vm313_vm0, %v1241_v3  ;;  %1130 = vmatprep.mubr.msk.bf16.mxu0 %vm313_vm0, %v1242_v4  ;;  %v1245_v6 = vld [vmem:[%s1380_s8 + $0x8] sm:$0xff]   ;;  %v1246_v7 = vld [vmem:[%s1380_s8 + $0x18] sm:$0xff]   ;;  %v1247_v8 = vld [vmem:[%s1380_s8 + $0x10] sm:$0xff]  }
  0x18   : > { %1113 = vmatmul.mubr.msk.bf16.vlgmr.msra.gmra.mrb[0].mxu1 %vm313_vm0, %v1244_v5  ;;  %1131 = vmatmul.mubr.msk.bf16.vlgmr.msra.gmra.mrb[0].mxu0 %vm313_vm0, %v1245_v6  ;;  %v1248_v9 = vld [vmem:[%s1380_s8 + $0x20] sm:$0xff]   ;;  %v1249_v10 = vld [vmem:[%s1380_s8 + $0x18] sm:$0xff]   ;;  %v1250_v11 = vld [vmem:[%s1380_s8 + $0x28] sm:$0xff]  }
  0x19   : > { %1165 = vmatpush3.bf16.msra.mxu1 %v1240_v1  ;;  %1147 = vmatpush3.bf16.msra.mxu0 %v1243_v2  ;;  %v1251_v12 = vld [vmem:[%s1380_s8 + $0x10] sm:$0xff]   ;;  %v1253_v14 = vld [vmem:[%s1380_s8 + $0x18] sm:$0xff]   ;;  %v1255_v16 = vld [vmem:[%s1380_s8 + $0x20] sm:$0xff]  }
  0x1a   : > { %1116 = vmatprep.mubr.msk.bf16.mxu1 %vm313_vm0, %v1246_v7  ;;  %1134 = vmatprep.mubr.msk.bf16.mxu0 %vm313_vm0, %v1247_v8  ;;  %v1252_v13 = vld [vmem:[%s1380_s8 + $0x30] sm:$0xff]   ;;  %v1254_v15 = vld [vmem:[%s1380_s8 + $0x38] sm:$0xff]   ;;  %v1256_v17 = vld [vmem:[%s1380_s8 + $0x40] sm:$0xff]  }
  0x1b   : > { %v1257_v18 = vld [vmem:[%s1380_s8 + $0x28] sm:$0xff]   ;;  %v1258_v19 = vld [vmem:[%s1380_s8 + $0x20] sm:$0xff]   ;;  %v1259_v20 = vld [vmem:[%s1380_s8 + $0x30] sm:$0xff]  }
  0x1c   : > { %v1260_v21 = vld [vmem:[%s1380_s8 + $0x28] sm:$0xff]   ;;  %v1261_v22 = vld [vmem:[%s1380_s8 + $0x38] sm:$0xff]   ;;  %v1262_v23 = vld [vmem:[%s1380_s8 + $0x30] sm:$0xff]  }
  0x1d   : > { %v1263_v24 = vld [vmem:[%s1380_s8 + $0x40] sm:$0xff]   ;;  %v1264_v25 = vld [vmem:[%s1380_s8 + $0x38] sm:$0xff]   ;;  %v1265_v26 = vld [vmem:[%s1380_s8 + $0x48] sm:$0xff]  }
  0x20   : > { %1117 = vmatmul.mubr.msk.bf16.gmra.mrb[4].mxu1 %vm313_vm0, %v1248_v9  ;;  %1135 = vmatmul.mubr.msk.bf16.gmra.mrb[4].mxu0 %vm313_vm0, %v1249_v10 }
  0x21   : > { %1120 = vmatprep.mubr.msk.bf16.mxu1 %vm313_vm0, %v1250_v11  ;;  %1148 = vmatprep.mubr.msk.bf16.mxu0 %vm313_vm0, %v1251_v12 }
  0x28   : > { %1121 = vmatmul.mubr.msk.bf16.gmra.mrb[8].mxu1 %vm313_vm0, %v1252_v13  ;;  %1149 = vmatmul.mubr.msk.bf16.vlgmr.msra.gmra.mrb[0].mxu0 %vm313_vm0, %v1253_v14 }
  0x29   : > { %1124 = vmatprep.mubr.msk.bf16.mxu1 %vm313_vm0, %v1254_v15  ;;  %1152 = vmatprep.mubr.msk.bf16.mxu0 %vm313_vm0, %v1255_v16 }
  0x30   : > { %1125 = vmatmul.mubr.msk.bf16.gmra.mrb[12].mxu1 %vm313_vm0, %v1256_v17  ;;  %1153 = vmatmul.mubr.msk.bf16.gmra.mrb[4].mxu0 %vm313_vm0, %v1257_v18 }
  0x31   : > { %1138 = vmatprep.mubr.msk.bf16.mxu1 %vm313_vm0, %v1258_v19  ;;  %1156 = vmatprep.mubr.msk.bf16.mxu0 %vm313_vm0, %v1259_v20 }
  0x38   : > { %1139 = vmatmul.mubr.msk.bf16.vlgmr.msra.gmra.mrb[8].mxu1 %vm313_vm0, %v1260_v21  ;;  %1157 = vmatmul.mubr.msk.bf16.gmra.mrb[8].mxu0 %vm313_vm0, %v1261_v22 }
  0x39   : > { %1142 = vmatprep.mubr.msk.bf16.mxu1 %vm313_vm0, %v1262_v23  ;;  %1160 = vmatprep.mubr.msk.bf16.mxu0 %vm313_vm0, %v1263_v24 }
  0x40   : > { %1143 = vmatmul.mubr.msk.bf16.gmra.mrb[12].mxu1 %vm313_vm0, %v1264_v25  ;;  %1161 = vmatmul.mubr.msk.bf16.gmra.mrb[12].mxu0 %vm313_vm0, %v1265_v26 }
  0xeb   : > { %v1114_v27 = vpop.f32.mrb[0].mxu1 }
  0xec   : > { %v372_v28 = vpop.f32.mrb[1].mxu1 }
  0xed   : > { %v1115_v29 = vpop.f32.mrb[2].mxu1 }
  0xee   : > { %v375_v30 = vpop.f32.mrb[3].mxu1 }
  0xf3   : > { %v1118_v31 = vpop.f32.mrb[4].mxu1 }
  0xf4   : > { %v388_v32 = vpop.f32.mrb[5].mxu1 }
  0xf5   : > { %v1119_v33 = vpop.f32.mrb[6].mxu1 }
  0xf6   : > { %v391_v34 = vpop.f32.mrb[7].mxu1 }
  0xfb   : > { %v1150_v35 = vpop.f32.mrb[0].mxu0 }
  0xfc   : > { %v1166_v37 = vadd.f32 %v1150_v35, %v1114_v27  ;;  %v729_v38 = vpop.f32.mrb[1].mxu0 }
  0xfd   : > { %v1167_v40 = vadd.f32 %v729_v38, %v372_v28  ;;  %v1151_v41 = vpop.f32.mrb[2].mxu0 }
  0xfe   : > { %v817_v42 = vmul.f32 %v1166_v37, %v1435_v36  ;;  %v1168_v43 = vadd.f32 %v1151_v41, %v1115_v29  ;;  %v732_v44 = vpop.f32.mrb[3].mxu0 }
  0xff   : > { %v815_v45 = vmul.f32 %v1167_v40, %v1435_v36  ;;  %v1169_v46 = vadd.f32 %v732_v44, %v375_v30 }
 0x100   : > { %v840_v47 = vadd.f32 %v1440_v39, %v817_v42  ;;  %v818_v48 = vmul.f32 %v1168_v43, %v1435_v36 }
 0x101   : > { %v838_v49 = vadd.f32 %v1440_v39, %v815_v45  ;;  %v816_v50 = vmul.f32 %v1169_v46, %v1435_v36 }
 0x102   : > { %v856_v51 = vmax.f32 %v840_v47, 0.0  ;;  %v841_v52 = vadd.f32 %v1440_v39, %v818_v48 }
 0x103   : > { %v854_v53 = vmax.f32 %v838_v49, 0.0  ;;  %v839_v54 = vadd.f32 %v1440_v39, %v816_v50  ;;  %v1154_v55 = vpop.f32.mrb[4].mxu0 }
 0x104   : > { %872 = vst [vmem:[%s1449_s24 + $0x10] sm:$0xff] %v856_v51  ;;  %v857_v56 = vmax.f32 %v841_v52, 0.0  ;;  %v1170_v57 = vadd.f32 %v1154_v55, %v1118_v31  ;;  %v745_v58 = vpop.f32.mrb[5].mxu0 }
 0x105   : > { %870 = vst [vmem:[%s1449_s24] sm:$0xff] %v854_v53  ;;  %v855_v59 = vmax.f32 %v839_v54, 0.0  ;;  %v1171_v60 = vadd.f32 %v745_v58, %v388_v32  ;;  %v1155_v61 = vpop.f32.mrb[6].mxu0 }
 0x106   : > { %873 = vst [vmem:[%s1449_s24 + $0x18] sm:$0xff] %v857_v56  ;;  %v821_v62 = vmul.f32 %v1170_v57, %v1435_v36  ;;  %v1172_v63 = vadd.f32 %v1155_v61, %v1119_v33  ;;  %v748_v0 = vpop.f32.mrb[7].mxu0 }
 0x107   : > { %871 = vst [vmem:[%s1449_s24 + $0x8] sm:$0xff] %v855_v59  ;;  %v819_v1 = vmul.f32 %v1171_v60, %v1435_v36  ;;  %v1173_v2 = vadd.f32 %v748_v0, %v391_v34 }
 0x108   : > { %v844_v3 = vadd.f32 %v1440_v39, %v821_v62  ;;  %v822_v4 = vmul.f32 %v1172_v63, %v1435_v36 }
 0x109   : > { %v842_v5 = vadd.f32 %v1440_v39, %v819_v1  ;;  %v820_v6 = vmul.f32 %v1173_v2, %v1435_v36 }
 0x10a   : > { %v860_v7 = vmax.f32 %v844_v3, 0.0  ;;  %v845_v8 = vadd.f32 %v1440_v39, %v822_v4 }
 0x10b   : > { %v1140_v9 = vpop.f32.mrb[8].mxu1  ;;  %v858_v10 = vmax.f32 %v842_v5, 0.0  ;;  %v843_v11 = vadd.f32 %v1440_v39, %v820_v6  ;;  %v1158_v12 = vpop.f32.mrb[8].mxu0 }
 0x10c   : > { %v571_v13 = vpop.f32.mrb[9].mxu1  ;;  %876 = vst [vmem:[%s1449_s24 + $0x30] sm:$0xff] %v860_v7  ;;  %v861_v14 = vmax.f32 %v845_v8, 0.0  ;;  %v1174_v15 = vadd.f32 %v1158_v12, %v1140_v9  ;;  %v761_v16 = vpop.f32.mrb[9].mxu0 }
 0x10d   : > { %v1141_v17 = vpop.f32.mrb[10].mxu1  ;;  %874 = vst [vmem:[%s1449_s24 + $0x20] sm:$0xff] %v858_v10  ;;  %v859_v18 = vmax.f32 %v843_v11, 0.0  ;;  %v1175_v19 = vadd.f32 %v761_v16, %v571_v13  ;;  %v1159_v20 = vpop.f32.mrb[10].mxu0 }
 0x10e   : > { %v574_v21 = vpop.f32.mrb[11].mxu1  ;;  %877 = vst [vmem:[%s1449_s24 + $0x38] sm:$0xff] %v861_v14  ;;  %v825_v22 = vmul.f32 %v1174_v15, %v1435_v36  ;;  %v1176_v23 = vadd.f32 %v1159_v20, %v1141_v17  ;;  %v764_v24 = vpop.f32.mrb[11].mxu0 }
 0x10f   : > { %875 = vst [vmem:[%s1449_s24 + $0x28] sm:$0xff] %v859_v18  ;;  %v823_v25 = vmul.f32 %v1175_v19, %v1435_v36  ;;  %v1177_v26 = vadd.f32 %v764_v24, %v574_v21 }
 0x110   : > { %v848_v27 = vadd.f32 %v1440_v39, %v825_v22  ;;  %v826_v28 = vmul.f32 %v1176_v23, %v1435_v36 }
 0x111   : > { %v846_v29 = vadd.f32 %v1440_v39, %v823_v25  ;;  %v824_v30 = vmul.f32 %v1177_v26, %v1435_v36 }
 0x112   : > { %v864_v31 = vmax.f32 %v848_v27, 0.0  ;;  %v849_v32 = vadd.f32 %v1440_v39, %v826_v28 }
 0x113   : > { %v1144_v33 = vpop.f32.mrb[12].mxu1  ;;  %v862_v34 = vmax.f32 %v846_v29, 0.0  ;;  %v847_v35 = vadd.f32 %v1440_v39, %v824_v30  ;;  %v1162_v37 = vpop.f32.mrb[12].mxu0 }
 0x114   : > { %v587_v38 = vpop.f32.mrb[13].mxu1  ;;  %880 = vst [vmem:[%s1449_s24 + $0x50] sm:$0xff] %v864_v31  ;;  %v865_v40 = vmax.f32 %v849_v32, 0.0  ;;  %v1178_v41 = vadd.f32 %v1162_v37, %v1144_v33  ;;  %v777_v42 = vpop.f32.mrb[13].mxu0 }
 0x115   : > { %v1145_v43 = vpop.f32.mrb[14].mxu1  ;;  %878 = vst [vmem:[%s1449_s24 + $0x40] sm:$0xff] %v862_v34  ;;  %v863_v44 = vmax.f32 %v847_v35, 0.0  ;;  %v1179_v45 = vadd.f32 %v777_v42, %v587_v38  ;;  %v1163_v46 = vpop.f32.mrb[14].mxu0 }
 0x116   : > { %v590_v47 = vpop.f32.mrb[15].mxu1  ;;  %881 = vst [vmem:[%s1449_s24 + $0x58] sm:$0xff] %v865_v40  ;;  %v829_v48 = vmul.f32 %v1178_v41, %v1435_v36  ;;  %v1180_v49 = vadd.f32 %v1163_v46, %v1145_v43  ;;  %v780_v50 = vpop.f32.mrb[15].mxu0 }
 0x117   : > { %879 = vst [vmem:[%s1449_s24 + $0x48] sm:$0xff] %v863_v44  ;;  %v827_v51 = vmul.f32 %v1179_v45, %v1435_v36  ;;  %v1181_v52 = vadd.f32 %v780_v50, %v590_v47 }
 0x118   : > { %v852_v53 = vadd.f32 %v1440_v39, %v829_v48  ;;  %v830_v54 = vmul.f32 %v1180_v49, %v1435_v36 }
 0x119   : > { %v850_v55 = vadd.f32 %v1440_v39, %v827_v51  ;;  %v828_v56 = vmul.f32 %v1181_v52, %v1435_v36 }
 0x11a   : > { %v868_v57 = vmax.f32 %v852_v53, 0.0  ;;  %v853_v58 = vadd.f32 %v1440_v39, %v830_v54 }
 0x11b   : > { %v866_v59 = vmax.f32 %v850_v55, 0.0  ;;  %v851_v60 = vadd.f32 %v1440_v39, %v828_v56 }
 0x11c   : > { %884 = vst [vmem:[%s1449_s24 + $0x70] sm:$0xff] %v868_v57  ;;  %v869_v61 = vmax.f32 %v853_v58, 0.0 }
 0x11d   : > { %882 = vst [vmem:[%s1449_s24 + $0x60] sm:$0xff] %v866_v59  ;;  %v867_v62 = vmax.f32 %v851_v60, 0.0 }
 0x11e   : > { %885 = vst [vmem:[%s1449_s24 + $0x78] sm:$0xff] %v869_v61 }
 0x11f   : > { %883 = vst [vmem:[%s1449_s24 + $0x68] sm:$0xff] %v867_v62 }
 0x120 PF: > { %s14_s19 = sadd.s32 1, %s1304_s19   ;;  %s1515_s15 = smov %s1296_s17 }
 0x121   : > { %p11_p7 = scmp.ge.s32.totalorder %s14_s19, 6   ;;  %s1516_s16 = smov %s1300_s18 }
 0x122   : > { %s1517_s17 = smov %s1520_s20  ;;  %s1518_s18 = smov %s1524_s21 }
 0x123   :  { %13 = sbr.rel (!%p11_p7) target bundleno = 3 (0x3), region = 71 }

// kernel: conv_block_forward.2
= control target key start
LH: loop header
LB: loop body
LE: loop exit
PB: predicated region body
PF: predicated region fallthrough
CT: control target
= control target key end

     0   :  { %s1318_s12 = smov 0   ;;  %s1320_s13 = smov 0   ;;  %s1440_s0 = inlined_call_operand.vmem [shape: bf16[2,18,16,16], index: 0, kind: input, shape index: {}]   ;;  %s1441_s1 = inlined_call_operand.vmem [shape: bf16[3,16,128], index: 1, kind: input, shape index: {}]   ;;  %s1442_s2 = inlined_call_operand.vmem [shape: f32[4,1,128], index: 2, kind: output, shape index: {0}]   ;;  %s1443_s3 = inlined_call_operand.vmem [shape: f32[4,1,128], index: 3, kind: output, shape index: {1}]  }
   0x1   :  { %s1322_s14 = smov 0   ;;  %s1324_s15 = smov 0  }
   0x2   :  { %s1326_s16 = smov 0  }
   0x3 LB: > { %s23_s17 = sadd.s32 1, %s1288_s14  ;;  %s26_s18 = sadd.s32 1, %s1292_s15  ;;  %s1296_s16 = sphi %s1326_s16, %s14_s16   ;;  %s1292_s15 = sphi %s1324_s15, %s1447_s15   ;;  %s1288_s14 = sphi %s1322_s14, %s1446_s14   ;;  %s1284_s13 = sphi %s1320_s13, %s1445_s13   ;;  %s1280_s12 = sphi %s1318_s12, %s1444_s12  }
   0x4   : > { %p24_p0 = scmp.ge.s32.totalorder %s23_s17, 2  ;;  %p971_p1 = scmp.ge.s32.totalorder %s1296_s16, 1 }
   0x5   : > { %p160_p2 = scmp.lt.s32.totalorder %s1296_s16, 5 }
   0x6   : > { %s1449_s17 = smov (%p24_p0, %s23_s17), 0  ;;  %s1451_s18 = smov (!%p24_p0, %s26_s18), %s1292_s15 }
   0x7   : > { %p161_p3 = pnand %p971_p1, %p160_p2  ;;  %p28_p4 = scmp.ge.s32.totalorder %s1451_s18, 2 }
   0x8   : > { %v1231_v0 = vld [vmem:[%s1441_s1 + $0x8] sm:$0xff] (!%p161_p3)   ;;  %p189_p5 = scmp.lt.s32.totalorder (!%p161_p3), %s1284_s13, 1  ;;  %v1232_v1 = vld [vmem:[%s1441_s1] sm:$0xff] (!%p161_p3)   ;;  %v1235_v2 = vld [vmem:[%s1441_s1 + $0x10] sm:$0xff] (!%p161_p3)   ;;  %s1072_s27 = sshll.u32 (!%p161_p3), %s1280_s12, 6  ;;  %vm300_vm0 = vcmask (!%p161_p3), 130048  }
   0x9   : > { %s1453_s18 = smov (%p28_p4, %s1451_s18), 0  ;;  %164 = sbr.rel (%p161_p3) target bundleno = 302 (0x12e), region = 28 }
   0xa   : > { %1102 = vmatprep.subr.bf16.mxu1 (!%p161_p3), %v1231_v0  ;;  %1120 = vmatprep.subr.bf16.mxu0 (!%p161_p3), %v1232_v1  ;;  %s973_s5 = sshll.u32 (!%p161_p3), %s1284_s13, 1 }
   0xb   : > { %1103 = vmatpush3.bf16.msra.mxu1 (!%p161_p3), %v1231_v0  ;;  %1121 = vmatpush3.bf16.msra.mxu0 (!%p161_p3), %v1232_v1  ;;  %s195_s6 = sadd.s32 (!%p161_p3), %s1280_s12, %s973_s5 }
   0xc   : > { %1156 = vmatprep.subr.bf16.mxu1 (!%p161_p3), %v1232_v1  ;;  %1138 = vmatprep.subr.bf16.mxu0 (!%p161_p3), %v1235_v2  ;;  %p196_p6 = scmp.lt.s32.totalorder (!%p161_p3), %s195_s6, 3 }
  0x10   : > { %s190_s23 = scalar_select %p189_p5, %s1284_s13, 1 }
  0x11   : > { %s1455_s6 = smov (!%p196_p6, %s195_s6), 3 }
  0x12   : > { %s1190_s26 = smul.u32 144, %s190_s23  ;;  %s198_s9 = scalar_lea.vmem %s1442_s2, %s1455_s6 }
  0x13   : > { %s205_s12 = scalar_lea.vmem %s1443_s3, %s1455_s6 }
  0x14   : > { %s193_s30 = scalar_lea.vmem %s1440_s0, %s1190_s26 }
  0x15   : > { %s1367_s4 = scalar_lea.vmem %s193_s30, %s1072_s27 }
  0x16   : > { %v1233_v3 = vld [vmem:[%s1367_s4 + $0x8] sm:$0xff]   ;;  %v1234_v4 = vld [vmem:[%s1367_s4] sm:$0xff]   ;;  %v1236_v5 = vld [vmem:[%s1367_s4 + $0x10] sm:$0xff]  }
  0x17   : > { %1104 = vmatprep.mubr.msk.bf16.mxu1 %vm300_vm0, %v1233_v3  ;;  %1122 = vmatprep.mubr.msk.bf16.mxu0 %vm300_vm0, %v1234_v4  ;;  %v1237_v6 = vld [vmem:[%s1367_s4 + $0x8] sm:$0xff]   ;;  %v1238_v7 = vld [vmem:[%s1367_s4 + $0x18] sm:$0xff]   ;;  %v1239_v8 = vld [vmem:[%s1367_s4 + $0x10] sm:$0xff]  }
  0x18   : > { %1105 = vmatmul.mubr.msk.bf16.vlgmr.msra.gmra.mrb[0].mxu1 %vm300_vm0, %v1236_v5  ;;  %1123 = vmatmul.mubr.msk.bf16.vlgmr.msra.gmra.mrb[0].mxu0 %vm300_vm0, %v1237_v6  ;;  %v1240_v9 = vld [vmem:[%s1367_s4 + $0x20] sm:$0xff]   ;;  %v1241_v10 = vld [vmem:[%s1367_s4 + $0x18] sm:$0xff]   ;;  %v1242_v11 = vld [vmem:[%s1367_s4 + $0x28] sm:$0xff]  }
  0x19   : > { %1157 = vmatpush3.bf16.msra.mxu1 %v1232_v1  ;;  %1139 = vmatpush3.bf16.msra.mxu0 %v1235_v2  ;;  %v1243_v12 = vld [vmem:[%s1367_s4 + $0x10] sm:$0xff]   ;;  %v1245_v14 = vld [vmem:[%s1367_s4 + $0x18] sm:$0xff]   ;;  %v1247_v16 = vld [vmem:[%s1367_s4 + $0x20] sm:$0xff]  }
  0x1a   : > { %1108 = vmatprep.mubr.msk.bf16.mxu1 %vm300_vm0, %v1238_v7  ;;  %1126 = vmatprep.mubr.msk.bf16.mxu0 %vm300_vm0, %v1239_v8  ;;  %v1244_v13 = vld [vmem:[%s1367_s4 + $0x30] sm:$0xff]   ;;  %v1246_v15 = vld [vmem:[%s1367_s4 + $0x38] sm:$0xff]   ;;  %v1248_v17 = vld [vmem:[%s1367_s4 + $0x40] sm:$0xff]  }
  0x1b   : > { %v1249_v18 = vld [vmem:[%s1367_s4 + $0x28] sm:$0xff]   ;;  %v1250_v19 = vld [vmem:[%s1367_s4 + $0x20] sm:$0xff]   ;;  %v1251_v20 = vld [vmem:[%s1367_s4 + $0x30] sm:$0xff]  }
  0x1c   : > { %v1252_v21 = vld [vmem:[%s1367_s4 + $0x28] sm:$0xff]   ;;  %v1253_v22 = vld [vmem:[%s1367_s4 + $0x38] sm:$0xff]   ;;  %v1254_v23 = vld [vmem:[%s1367_s4 + $0x30] sm:$0xff]  }
  0x1d   : > { %v1255_v24 = vld [vmem:[%s1367_s4 + $0x40] sm:$0xff]   ;;  %v1256_v25 = vld [vmem:[%s1367_s4 + $0x38] sm:$0xff]   ;;  %v1257_v26 = vld [vmem:[%s1367_s4 + $0x48] sm:$0xff]  }
  0x20   : > { %1109 = vmatmul.mubr.msk.bf16.gmra.mrb[4].mxu1 %vm300_vm0, %v1240_v9  ;;  %1127 = vmatmul.mubr.msk.bf16.gmra.mrb[4].mxu0 %vm300_vm0, %v1241_v10 }
  0x21   : > { %1112 = vmatprep.mubr.msk.bf16.mxu1 %vm300_vm0, %v1242_v11  ;;  %1140 = vmatprep.mubr.msk.bf16.mxu0 %vm300_vm0, %v1243_v12 }
  0x28   : > { %1113 = vmatmul.mubr.msk.bf16.gmra.mrb[8].mxu1 %vm300_vm0, %v1244_v13  ;;  %1141 = vmatmul.mubr.msk.bf16.vlgmr.msra.gmra.mrb[0].mxu0 %vm300_vm0, %v1245_v14 }
  0x29   : > { %1116 = vmatprep.mubr.msk.bf16.mxu1 %vm300_vm0, %v1246_v15  ;;  %1144 = vmatprep.mubr.msk.bf16.mxu0 %vm300_vm0, %v1247_v16 }
  0x30   : > { %1117 = vmatmul.mubr.msk.bf16.gmra.mrb[12].mxu1 %vm300_vm0, %v1248_v17  ;;  %1145 = vmatmul.mubr.msk.bf16.gmra.mrb[4].mxu0 %vm300_vm0, %v1249_v18 }
  0x31   : > { %1130 = vmatprep.mubr.msk.bf16.mxu1 %vm300_vm0, %v1250_v19  ;;  %1148 = vmatprep.mubr.msk.bf16.mxu0 %vm300_vm0, %v1251_v20 }
  0x38   : > { %1131 = vmatmul.mubr.msk.bf16.vlgmr.msra.gmra.mrb[8].mxu1 %vm300_vm0, %v1252_v21  ;;  %1149 = vmatmul.mubr.msk.bf16.gmra.mrb[8].mxu0 %vm300_vm0, %v1253_v22 }
  0x39   : > { %1134 = vmatprep.mubr.msk.bf16.mxu1 %vm300_vm0, %v1254_v23  ;;  %1152 = vmatprep.mubr.msk.bf16.mxu0 %vm300_vm0, %v1255_v24 }
  0x40   : > { %1135 = vmatmul.mubr.msk.bf16.gmra.mrb[12].mxu1 %vm300_vm0, %v1256_v25  ;;  %1153 = vmatmul.mubr.msk.bf16.gmra.mrb[12].mxu0 %vm300_vm0, %v1257_v26 }
  0xeb   : > { %v1106_v27 = vpop.f32.mrb[0].mxu1 }
  0xec   : > { %v359_v28 = vpop.f32.mrb[1].mxu1 }
  0xed   : > { %v1107_v29 = vpop.f32.mrb[2].mxu1 }
  0xee   : > { %v362_v30 = vpop.f32.mrb[3].mxu1 }
  0xf3   : > { %v1110_v31 = vpop.f32.mrb[4].mxu1 }
  0xf4   : > { %v375_v32 = vpop.f32.mrb[5].mxu1 }
  0xf5   : > { %v1111_v33 = vpop.f32.mrb[6].mxu1 }
  0xf6   : > { %v378_v34 = vpop.f32.mrb[7].mxu1 }
  0xfb   : > { %v1142_v35 = vpop.f32.mrb[0].mxu0 }
  0xfc   : > { %v1158_v36 = vadd.f32 %v1142_v35, %v1106_v27  ;;  %v716_v37 = vpop.f32.mrb[1].mxu0 }
  0xfd   : > { %v1159_v38 = vadd.f32 %v716_v37, %v359_v28  ;;  %v1143_v39 = vpop.f32.mrb[2].mxu0 }
  0xfe   : > { %v1160_v40 = vadd.f32 %v1143_v39, %v1107_v29  ;;  %v719_v41 = vpop.f32.mrb[3].mxu0  ;;  %v819_v46 = vmul.f32 %v1158_v36, %v1158_v36 }
  0xff   : > { %v1161_v42 = vadd.f32 %v719_v41, %v362_v30  ;;  %v817_v43 = vmul.f32 %v1159_v38, %v1159_v38 }
 0x100   : > { %v820_v52 = vmul.f32 %v1160_v40, %v1160_v40 }
 0x101   : > { %v795_v44 = vadd.f32 %v1161_v42, %v1159_v38  ;;  %v818_v45 = vmul.f32 %v1161_v42, %v1161_v42 }
 0x103   : > { %v796_v47 = vadd.f32 %v1158_v36, %v795_v44  ;;  %v833_v48 = vadd.f32 %v818_v45, %v817_v43  ;;  %v1146_v49 = vpop.f32.mrb[4].mxu0 }
 0x104   : > { %v1162_v50 = vadd.f32 %v1146_v49, %v1110_v31  ;;  %v732_v51 = vpop.f32.mrb[5].mxu0 }
 0x105   : > { %v834_v53 = vadd.f32 %v833_v48, %v819_v46  ;;  %v1163_v54 = vadd.f32 %v732_v51, %v375_v32  ;;  %v797_v55 = vadd.f32 %v1160_v40, %v796_v47  ;;  %v1147_v56 = vpop.f32.mrb[6].mxu0 }
 0x106   : > { %v1164_v57 = vadd.f32 %v1147_v56, %v1111_v33  ;;  %v735_v58 = vpop.f32.mrb[7].mxu0  ;;  %v823_v3 = vmul.f32 %v1162_v50, %v1162_v50 }
 0x107   : > { %v798_v59 = vadd.f32 %v1163_v54, %v797_v55  ;;  %v821_v60 = vmul.f32 %v1163_v54, %v1163_v54  ;;  %v835_v61 = vadd.f32 %v834_v53, %v820_v52  ;;  %v1165_v62 = vadd.f32 %v735_v58, %v378_v34 }
 0x108   : > { %v824_v11 = vmul.f32 %v1164_v57, %v1164_v57 }
 0x109   : > { %v836_v63 = vadd.f32 %v835_v61, %v821_v60  ;;  %v799_v0 = vadd.f32 %v1165_v62, %v798_v59  ;;  %v822_v1 = vmul.f32 %v1165_v62, %v1165_v62 }
 0x10b   : > { %v1132_v2 = vpop.f32.mrb[8].mxu1  ;;  %v800_v4 = vadd.f32 %v1162_v50, %v799_v0  ;;  %v837_v5 = vadd.f32 %v836_v63, %v822_v1  ;;  %v1150_v6 = vpop.f32.mrb[8].mxu0 }
 0x10c   : > { %v558_v7 = vpop.f32.mrb[9].mxu1  ;;  %v1166_v8 = vadd.f32 %v1150_v6, %v1132_v2  ;;  %v748_v9 = vpop.f32.mrb[9].mxu0 }
 0x10d   : > { %v1133_v10 = vpop.f32.mrb[10].mxu1  ;;  %v838_v12 = vadd.f32 %v837_v5, %v823_v3  ;;  %v1167_v13 = vadd.f32 %v748_v9, %v558_v7  ;;  %v801_v14 = vadd.f32 %v1164_v57, %v800_v4  ;;  %v1151_v15 = vpop.f32.mrb[10].mxu0 }
 0x10e   : > { %v561_v16 = vpop.f32.mrb[11].mxu1  ;;  %v1168_v17 = vadd.f32 %v1151_v15, %v1133_v10  ;;  %v751_v18 = vpop.f32.mrb[11].mxu0  ;;  %v827_v27 = vmul.f32 %v1166_v8, %v1166_v8 }
 0x10f   : > { %v802_v19 = vadd.f32 %v1167_v13, %v801_v14  ;;  %v825_v20 = vmul.f32 %v1167_v13, %v1167_v13  ;;  %v839_v21 = vadd.f32 %v838_v12, %v824_v11  ;;  %v1169_v22 = vadd.f32 %v751_v18, %v561_v16 }
 0x110   : > { %v828_v35 = vmul.f32 %v1168_v17, %v1168_v17 }
 0x111   : > { %v840_v23 = vadd.f32 %v839_v21, %v825_v20  ;;  %v803_v24 = vadd.f32 %v1169_v22, %v802_v19  ;;  %v826_v25 = vmul.f32 %v1169_v22, %v1169_v22 }
 0x113   : > { %v1136_v26 = vpop.f32.mrb[12].mxu1  ;;  %v804_v28 = vadd.f32 %v1166_v8, %v803_v24  ;;  %v841_v29 = vadd.f32 %v840_v23, %v826_v25  ;;  %v1154_v30 = vpop.f32.mrb[12].mxu0 }
 0x114   : > { %v574_v31 = vpop.f32.mrb[13].mxu1  ;;  %v1170_v32 = vadd.f32 %v1154_v30, %v1136_v26  ;;  %v764_v33 = vpop.f32.mrb[13].mxu0 }
 0x115   : > { %v1137_v34 = vpop.f32.mrb[14].mxu1  ;;  %v842_v36 = vadd.f32 %v841_v29, %v827_v27  ;;  %v1171_v37 = vadd.f32 %v764_v33, %v574_v31  ;;  %v805_v38 = vadd.f32 %v1168_v17, %v804_v28  ;;  %v1155_v39 = vpop.f32.mrb[14].mxu0 }
 0x116   : > { %v577_v40 = vpop.f32.mrb[15].mxu1  ;;  %v1172_v41 = vadd.f32 %v1155_v39, %v1137_v34  ;;  %v767_v42 = vpop.f32.mrb[15].mxu0  ;;  %v831_v50 = vmul.f32 %v1170_v32, %v1170_v32 }
 0x117   : > { %v806_v43 = vadd.f32 %v1171_v37, %v805_v38  ;;  %v829_v44 = vmul.f32 %v1171_v37, %v1171_v37  ;;  %v843_v45 = vadd.f32 %v842_v36, %v828_v35  ;;  %v1173_v46 = vadd.f32 %v767_v42, %v577_v40 }
 0x118   : > { %v832_v53 = vmul.f32 %v1172_v41, %v1172_v41 }
 0x119   : > { %v844_v47 = vadd.f32 %v843_v45, %v829_v44  ;;  %v807_v48 = vadd.f32 %v1173_v46, %v806_v43  ;;  %v830_v49 = vmul.f32 %v1173_v46, %v1173_v46 }
 0x11b   : > { %v808_v51 = vadd.f32 %v1170_v32, %v807_v48  ;;  %v845_v52 = vadd.f32 %v844_v47, %v830_v49 }
 0x11d   : > { %v809_v54 = vadd.f32 %v1172_v41, %v808_v51  ;;  %v846_v55 = vadd.f32 %v845_v52, %v831_v50 }
 0x11f   : > { %v810_v56 = vrot.slane %v809_v54, 4  ;;  %v847_v57 = vadd.f32 %v846_v55, %v832_v53 }
 0x121   : > { %v811_v58 = vadd.f32 %v810_v56, %v809_v54  ;;  %v848_v59 = vrot.slane %v847_v57, 4 }
 0x123   : > { %v812_v60 = vrot.slane %v811_v58, 2  ;;  %v849_v61 = vadd.f32 %v848_v59, %v847_v57 }
 0x125   : > { %v813_v62 = vadd.f32 %v812_v60, %v811_v58  ;;  %v850_v63 = vrot.slane %v849_v61, 2 }
 0x127   : > { %v814_v0 = vrot.slane %v813_v62, 1  ;;  %v851_v1 = vadd.f32 %v850_v63, %v849_v61 }
 0x129   : > { %v815_v2 = vadd.f32 %v814_v0, %v813_v62  ;;  %v852_v3 = vrot.slane %v851_v1, 1 }
 0x12b   : > { %v853_v4 = vadd.f32 %v852_v3, %v851_v1  ;;  %855 = vst [vmem:[%s198_s9] sm:$0x1] %v815_v2 }
 0x12d   : > { %856 = vst [vmem:[%s205_s12] sm:$0x1] %v853_v4 }
 0x12e PF: > { %s14_s16 = sadd.s32 1, %s1296_s16   ;;  %s1444_s12 = smov %s1288_s14 }
 0x12f   : > { %p11_p7 = scmp.ge.s32.totalorder %s14_s16, 6   ;;  %s1445_s13 = smov %s1292_s15 }
 0x130   : > { %s1446_s14 = smov %s1449_s17  ;;  %s1447_s15 = smov %s1453_s18 }
 0x131   :  { %13 = sbr.rel (!%p11_p7) target bundleno = 3 (0x3), region = 75 }

</bundles_post_ra>
